<compile_context>
chip_gen: v7x
topology: tpu7x:2x2x1
jax: 0.10.0
libtpu: 0.0.40
codegen_flags: <defaults>
</compile_context>

<pallas_src>
import functools

import jax
import jax.numpy as jnp
from jax.experimental import pallas as pl
from jax.experimental.pallas import tpu as pltpu


def _ce_kernel(logits_ref, labels_ref, out_ref,
               m_ref, l_ref, picked_ref, sumlog_ref,
               *, eps: float, inv_c: float, c_total: int, tile_c: int,
               needs_col_mask: bool):
    j = pl.program_id(1)
    last_j = pl.num_programs(1) - 1

    @pl.when(j == 0)
    def _():
        m_ref[...] = jnp.full(m_ref.shape, -jnp.inf, m_ref.dtype)
        l_ref[...] = jnp.zeros(l_ref.shape, l_ref.dtype)
        picked_ref[...] = jnp.zeros(picked_ref.shape, picked_ref.dtype)
        sumlog_ref[...] = jnp.zeros(sumlog_ref.shape, sumlog_ref.dtype)

    # TODO(synk): on v6e/v7x a deferred-cast bf16 compute path (f32 only in the
    # accumulations) would halve VALU work for bf16 logits; kept f32 for
    # accuracy and v5e compatibility.
    x = logits_ref[...].astype(jnp.float32)          # (tn, tc)
    labels = labels_ref[...]                          # (tn, 1) int32
    tn, tc = x.shape

    # Global class index of each lane of this chunk.
    col = jax.lax.broadcasted_iota(jnp.int32, (tn, tc), 1) + j * tile_c

    if needs_col_mask:
        valid = col < c_total                         # mask OOB lanes (last chunk)
        x_lse = jnp.where(valid, x, -jnp.inf)
    else:
        x_lse = x

    # Online log-sum-exp pieces.
    m_prev = m_ref[...]
    m_new = jnp.maximum(m_prev, jnp.max(x_lse, axis=-1, keepdims=True))
    alpha = jnp.exp(m_prev - m_new)
    p_sum = jnp.sum(jnp.exp(x_lse - m_new), axis=-1, keepdims=True)
    l_ref[...] = alpha * l_ref[...] + p_sum
    m_ref[...] = m_new

    # Label gather as select + cross-lane sum (no one-hot / weight multiply).
    picked_ref[...] += jnp.sum(jnp.where(col == labels, x, 0.0),
                               axis=-1, keepdims=True)

    if eps != 0.0:
        x_s = jnp.where(valid, x, 0.0) if needs_col_mask else x
        sumlog_ref[...] += jnp.sum(x_s, axis=-1, keepdims=True)

    @pl.when(j == last_j)
    def _():
        lse = m_ref[...] + jnp.log(l_ref[...])
        loss = lse - (1.0 - eps) * picked_ref[...]
        if eps != 0.0:
            loss = loss - (eps * inv_c) * sumlog_ref[...]
        # TODO(synk): a lane-dense (1, tile_n) output slab would avoid the
        # single-lane masked store; output bytes are negligible so kept simple.
        out_ref[...] = loss.astype(out_ref.dtype)


def _vmem_capacity_bytes(default=64 << 20):
    try:
        return int(pltpu.get_tpu_info().vmem_capacity_bytes)
    except Exception:
        return int(default)


def asd_loss(logits, labels, *, label_smoothing: float = 0.0,
             reduction: bool = True, tile_n=None, tile_c=None):
    """Pallas equivalent of ASDLoss.forward(logits, labels).

    logits: [N, C] float (f32 or bf16, kept in native dtype over HBM)
    labels: [N] int class indices in [0, C)
    Returns a scalar (reduction=True, torch 'mean') or [N] per-sample losses.
    """
    n, c = logits.shape
    labels2d = labels.astype(jnp.int32).reshape(n, 1)
    itemsize = jnp.dtype(logits.dtype).itemsize

    vmem_cap = _vmem_capacity_bytes()
    # ~8 MiB logits blocks on 128 MiB-VMEM parts (v5e/v6e), ~4 MiB on v7x.
    target_block = (8 << 20) if vmem_cap >= (100 << 20) else (4 << 20)
    vmem_limit = int(min(vmem_cap * 3 // 4, 96 << 20))

    # Class-axis chunking (online LSE) kicks in for vocab-scale C.
    if tile_c is None:
        tile_c = c if c <= 8192 else 2048
    tile_c = min(int(tile_c), c)
    if tile_c != c and tile_c % 128 != 0:
        raise ValueError("tile_c must equal C or be a multiple of 128")
    num_c_tiles = pl.cdiv(c, tile_c)
    needs_col_mask = (c % tile_c) != 0

    if tile_n is None:
        bytes_per_row = tile_c * itemsize
        tile_n = max(8, min(32768, (target_block // max(bytes_per_row, 1)) // 8 * 8))
        # Keep >=4 row tiles so both v7x TensorCores get grid slices on the
        # 'parallel' axis (only binds when N is big enough to be worth it).
        if n >= 64:
            tile_n = min(tile_n, max(8, ((-(-n // 4)) + 7) // 8 * 8))
        # Guard: double-buffered input block + ~4x f32 temporaries under limit.
        def _step_bytes(tn):
            return 2 * tn * tile_c * itemsize + 4 * tn * tile_c * 4
        while tile_n > 8 and _step_bytes(tile_n) > int(vmem_limit * 0.8):
            tile_n = max(8, (tile_n // 2) // 8 * 8)
    tile_n = int(tile_n)
    if tile_n >= n:
        tile_n = n                      # single full-extent row block
    elif tile_n % 8 != 0:
        tile_n = max(8, tile_n // 8 * 8)
    num_row_tiles = pl.cdiv(n, tile_n)
    # No jnp.pad for ragged N: OOB rows of the partial last block are garbage
    # but per-row independent and never written back.

    kernel = functools.partial(
        _ce_kernel, eps=float(label_smoothing), inv_c=1.0 / float(c),
        c_total=int(c), tile_c=int(tile_c), needs_col_mask=bool(needs_col_mask))

    out = pl.pallas_call(
        kernel,
        out_shape=jax.ShapeDtypeStruct((n, 1), jnp.float32),
        grid_spec=pltpu.PrefetchScalarGridSpec(
            num_scalar_prefetch=0,
            grid=(num_row_tiles, num_c_tiles),
            in_specs=[
                pl.BlockSpec((tile_n, tile_c), lambda i, j: (i, j)),  # logits
                pl.BlockSpec((tile_n, 1), lambda i, j: (i, 0)),       # labels
            ],
            out_specs=pl.BlockSpec((tile_n, 1), lambda i, j: (i, 0)),
            scratch_shapes=[pltpu.VMEM((tile_n, 1), jnp.float32)] * 4,
        ),
        compiler_params=pltpu.CompilerParams(
            dimension_semantics=("parallel", "arbitrary"),
            vmem_limit_bytes=vmem_limit),
    )(logits, labels2d)

    per_sample = out[:, 0]
    if reduction:
        # torch 'mean'; multiply by precomputed reciprocal instead of dividing.
        return jnp.sum(per_sample) * (1.0 / float(n))
    return per_sample


def _reference(logits, labels, eps, reduction):
    # Pure-JAX reference of torch.nn.CrossEntropyLoss semantics.
    logits = logits.astype(jnp.float32)
    logp = jax.nn.log_softmax(logits, axis=-1)
    n, c = logits.shape
    nll = -logp[jnp.arange(n), labels]
    smooth = -jnp.mean(logp, axis=-1)
    per = (1.0 - eps) * nll + eps * smooth
    return jnp.mean(per) if reduction else per


if __name__ == "__main__":
    key = jax.random.PRNGKey(0)
    k1, k2, k3, k4, k5, k6 = jax.random.split(key, 6)

    # Small shapes matching nn.CrossEntropyLoss(logits[N, C], labels[N]).
    N, C = 8, 32
    logits = jax.random.normal(k1, (N, C), dtype=jnp.float32)
    labels = jax.random.randint(k2, (N,), 0, C, dtype=jnp.int32)

    loss_mean = asd_loss(logits, labels, label_smoothing=0.0, reduction=True)
    loss_none = asd_loss(logits, labels, label_smoothing=0.1, reduction=False)
    jax.block_until_ready((loss_mean, loss_none))
    assert jnp.allclose(loss_mean, _reference(logits, labels, 0.0, True),
                        atol=2e-5, rtol=2e-5)
    assert jnp.allclose(loss_none, _reference(logits, labels, 0.1, False),
                        atol=2e-5, rtol=2e-5)

    # Ragged N with NO padding: 3 row tiles of 8 over N=20 (last tile partial).
    N2, C2 = 20, 128
    logits2 = jax.random.normal(k3, (N2, C2), dtype=jnp.float32)
    labels2 = jax.random.randint(k4, (N2,), 0, C2, dtype=jnp.int32)
    lm2 = asd_loss(logits2, labels2, label_smoothing=0.1, reduction=True, tile_n=8)
    ln2 = asd_loss(logits2, labels2, label_smoothing=0.0, reduction=False, tile_n=8)
    jax.block_until_ready((lm2, ln2))
    assert jnp.allclose(lm2, _reference(logits2, labels2, 0.1, True),
                        atol=2e-5, rtol=2e-5)
    assert jnp.allclose(ln2, _reference(logits2, labels2, 0.0, False),
                        atol=2e-5, rtol=2e-5)

    # bf16 logits over HBM (half the memory traffic); in-kernel compute is f32.
    logits_bf16 = logits2.astype(jnp.bfloat16)
    lb = asd_loss(logits_bf16, labels2, label_smoothing=0.0, reduction=True,
                  tile_n=16)
    jax.block_until_ready(lb)
    assert jnp.allclose(
        lb, _reference(logits_bf16.astype(jnp.float32), labels2, 0.0, True),
        atol=2e-5, rtol=2e-5)

    # Chunked class axis (online LSE) with a ragged last chunk: C=300, tile_c=128.
    N3, C3 = 24, 300
    logits3 = jax.random.normal(k5, (N3, C3), dtype=jnp.float32)
    labels3 = jax.random.randint(k6, (N3,), 0, C3, dtype=jnp.int32)
    lm3 = asd_loss(logits3, labels3, label_smoothing=0.1, reduction=True,
                   tile_n=8, tile_c=128)
    ln3 = asd_loss(logits3, labels3, label_smoothing=0.0, reduction=False,
                   tile_n=8, tile_c=128)
    jax.block_until_ready((lm3, ln3))
    assert jnp.allclose(lm3, _reference(logits3, labels3, 0.1, True),
                        atol=2e-5, rtol=2e-5)
    assert jnp.allclose(ln3, _reference(logits3, labels3, 0.0, False),
                        atol=2e-5, rtol=2e-5)

    print("KERNEL_OK")
</pallas_src>

<mosaic_0001>
module attributes {stable_mosaic.version = 11 : i64} {
  func.func @_ce_kernel(%arg0: i32, %arg1: i32, %arg2: memref<8x32xf32, #tpu.memory_space<vmem>>, %arg3: memref<8x1xi32, #tpu.memory_space<vmem>>, %arg4: memref<8x1xf32, #tpu.memory_space<vmem>>, %arg5: memref<8x1xf32, #tpu.memory_space<vmem>>, %arg6: memref<8x1xf32, #tpu.memory_space<vmem>>, %arg7: memref<8x1xf32, #tpu.memory_space<vmem>>, %arg8: memref<8x1xf32, #tpu.memory_space<vmem>>) attributes {dimension_semantics = [#tpu.dimension_semantics<parallel>, #tpu.dimension_semantics<arbitrary>], iteration_bounds = array<i64: 1, 1>, scalar_prefetch = 0 : i64, scratch_operands = 4 : i64, tpu.core_type = #tpu.core_type<tc>, window_params = [{transform_indices = @transform_0, window_bounds = array<i64: 8, 32>}, {transform_indices = @transform_1, window_bounds = array<i64: 8, 1>}, {transform_indices = @transform_2, window_bounds = array<i64: 8, 1>}]} {
    %c0_i32 = arith.constant 0 : i32
    %0 = arith.cmpi eq, %arg1, %c0_i32 : i32
    %1 = arith.extui %0 : i1 to i32
    %c0_i32_0 = arith.constant 0 : i32
    %2 = arith.cmpi ne, %1, %c0_i32_0 : i32
    scf.if %2 {
      %cst_21 = arith.constant 0xFF800000 : f32
      %37 = vector.broadcast %cst_21 : f32 to vector<8x1xf32>
      %c0_22 = arith.constant 0 : index
      %c0_23 = arith.constant 0 : index
      %38 = vector.load %arg5[%c0_22, %c0_23] : memref<8x1xf32, #tpu.memory_space<vmem>>, vector<8x1xf32>
      tpu.vector_store %arg5[%c0_22, %c0_23], %37 {strides = array<i32>} : memref<8x1xf32, #tpu.memory_space<vmem>>, vector<8x1xf32>,
      %cst_24 = arith.constant 0.000000e+00 : f32
      %39 = vector.broadcast %cst_24 : f32 to vector<8x1xf32>
      %c0_25 = arith.constant 0 : index
      %c0_26 = arith.constant 0 : index
      %40 = vector.load %arg6[%c0_25, %c0_26] : memref<8x1xf32, #tpu.memory_space<vmem>>, vector<8x1xf32>
      tpu.vector_store %arg6[%c0_25, %c0_26], %39 {strides = array<i32>} : memref<8x1xf32, #tpu.memory_space<vmem>>, vector<8x1xf32>,
      %cst_27 = arith.constant 0.000000e+00 : f32
      %41 = vector.broadcast %cst_27 : f32 to vector<8x1xf32>
      %c0_28 = arith.constant 0 : index
      %c0_29 = arith.constant 0 : index
      %42 = vector.load %arg7[%c0_28, %c0_29] : memref<8x1xf32, #tpu.memory_space<vmem>>, vector<8x1xf32>
      tpu.vector_store %arg7[%c0_28, %c0_29], %41 {strides = array<i32>} : memref<8x1xf32, #tpu.memory_space<vmem>>, vector<8x1xf32>,
      %cst_30 = arith.constant 0.000000e+00 : f32
      %43 = vector.broadcast %cst_30 : f32 to vector<8x1xf32>
      %c0_31 = arith.constant 0 : index
      %c0_32 = arith.constant 0 : index
      %44 = vector.load %arg8[%c0_31, %c0_32] : memref<8x1xf32, #tpu.memory_space<vmem>>, vector<8x1xf32>
      tpu.vector_store %arg8[%c0_31, %c0_32], %43 {strides = array<i32>} : memref<8x1xf32, #tpu.memory_space<vmem>>, vector<8x1xf32>,
    } else {
    }
    %c0 = arith.constant 0 : index
    %c0_1 = arith.constant 0 : index
    %3 = vector.load %arg2[%c0, %c0_1] : memref<8x32xf32, #tpu.memory_space<vmem>>, vector<8x32xf32>
    %c0_2 = arith.constant 0 : index
    %c0_3 = arith.constant 0 : index
    %4 = vector.load %arg3[%c0_2, %c0_3] : memref<8x1xi32, #tpu.memory_space<vmem>>, vector<8x1xi32>
    %5 = tpu.iota {dimensions = array<i32: 1>} : vector<8x32xi32>
    %c32_i32 = arith.constant 32 : i32
    %6 = arith.muli %arg1, %c32_i32 : i32
    %7 = vector.broadcast %6 : i32 to vector<8x32xi32>
    %8 = arith.addi %5, %7 : vector<8x32xi32>
    %c0_4 = arith.constant 0 : index
    %c0_5 = arith.constant 0 : index
    %9 = vector.load %arg5[%c0_4, %c0_5] : memref<8x1xf32, #tpu.memory_space<vmem>>, vector<8x1xf32>
    %cst = arith.constant dense<0xFF800000> : vector<8xf32>
    %10 = vector.multi_reduction <maximumf>, %3, %cst [1] : vector<8x32xf32> to vector<8xf32>
    %11 = vector.shape_cast %10 : vector<8xf32> to vector<8x1xf32>
    %12 = arith.maximumf %9, %11 : vector<8x1xf32>
    %13 = arith.subf %9, %12 : vector<8x1xf32>
    %14 = math.exp %13 : vector<8x1xf32>
    %15 = vector.broadcast %12 : vector<8x1xf32> to vector<8x32xf32>
    %16 = arith.subf %3, %15 : vector<8x32xf32>
    %17 = math.exp %16 : vector<8x32xf32>
    %cst_6 = arith.constant dense<0.000000e+00> : vector<8xf32>
    %18 = vector.multi_reduction <add>, %17, %cst_6 [1] : vector<8x32xf32> to vector<8xf32>
    %19 = vector.shape_cast %18 : vector<8xf32> to vector<8x1xf32>
    %c0_7 = arith.constant 0 : index
    %c0_8 = arith.constant 0 : index
    %20 = vector.load %arg6[%c0_7, %c0_8] : memref<8x1xf32, #tpu.memory_space<vmem>>, vector<8x1xf32>
    %21 = arith.mulf %14, %20 : vector<8x1xf32>
    %22 = arith.addf %21, %19 : vector<8x1xf32>
    %c0_9 = arith.constant 0 : index
    %c0_10 = arith.constant 0 : index
    %23 = vector.load %arg6[%c0_9, %c0_10] : memref<8x1xf32, #tpu.memory_space<vmem>>, vector<8x1xf32>
    tpu.vector_store %arg6[%c0_9, %c0_10], %22 {strides = array<i32>} : memref<8x1xf32, #tpu.memory_space<vmem>>, vector<8x1xf32>,
    %c0_11 = arith.constant 0 : index
    %c0_12 = arith.constant 0 : index
    %24 = vector.load %arg5[%c0_11, %c0_12] : memref<8x1xf32, #tpu.memory_space<vmem>>, vector<8x1xf32>
    tpu.vector_store %arg5[%c0_11, %c0_12], %12 {strides = array<i32>} : memref<8x1xf32, #tpu.memory_space<vmem>>, vector<8x1xf32>,
    %c0_13 = arith.constant 0 : index
    %c0_14 = arith.constant 0 : index
    %25 = vector.load %arg7[%c0_13, %c0_14] : memref<8x1xf32, #tpu.memory_space<vmem>>, vector<8x1xf32>
    %26 = vector.broadcast %4 : vector<8x1xi32> to vector<8x32xi32>
    %27 = arith.cmpi eq, %8, %26 : vector<8x32xi32>
    %cst_15 = arith.constant 0.000000e+00 : f32
    %28 = vector.broadcast %cst_15 : f32 to vector<8x32xf32>
    %29 = arith.select %27, %3, %28 : vector<8x32xi1>, vector<8x32xf32>
    %cst_16 = arith.constant dense<0.000000e+00> : vector<8xf32>
    %30 = vector.multi_reduction <add>, %29, %cst_16 [1] : vector<8x32xf32> to vector<8xf32>
    %31 = vector.shape_cast %30 : vector<8xf32> to vector<8x1xf32>
    %32 = arith.addf %25, %31 : vector<8x1xf32>
    %c0_17 = arith.constant 0 : index
    %c0_18 = arith.constant 0 : index
    %33 = vector.load %arg7[%c0_17, %c0_18] : memref<8x1xf32, #tpu.memory_space<vmem>>, vector<8x1xf32>
    tpu.vector_store %arg7[%c0_17, %c0_18], %32 {strides = array<i32>} : memref<8x1xf32, #tpu.memory_space<vmem>>, vector<8x1xf32>,
    %c0_i32_19 = arith.constant 0 : i32
    %34 = arith.cmpi eq, %arg1, %c0_i32_19 : i32
    %35 = arith.extui %34 : i1 to i32
    %c0_i32_20 = arith.constant 0 : i32
    %36 = arith.cmpi ne, %35, %c0_i32_20 : i32
    scf.if %36 {
      %c0_21 = arith.constant 0 : index
      %c0_22 = arith.constant 0 : index
      %37 = vector.load %arg5[%c0_21, %c0_22] : memref<8x1xf32, #tpu.memory_space<vmem>>, vector<8x1xf32>
      %c0_23 = arith.constant 0 : index
      %c0_24 = arith.constant 0 : index
      %38 = vector.load %arg6[%c0_23, %c0_24] : memref<8x1xf32, #tpu.memory_space<vmem>>, vector<8x1xf32>
      %39 = math.log %38 : vector<8x1xf32>
      %40 = arith.addf %37, %39 : vector<8x1xf32>
      %c0_25 = arith.constant 0 : index
      %c0_26 = arith.constant 0 : index
      %41 = vector.load %arg7[%c0_25, %c0_26] : memref<8x1xf32, #tpu.memory_space<vmem>>, vector<8x1xf32>
      %cst_27 = arith.constant 1.000000e+00 : f32
      %42 = vector.broadcast %cst_27 : f32 to vector<8x1xf32>
      %43 = arith.mulf %42, %41 : vector<8x1xf32>
      %44 = arith.subf %40, %43 : vector<8x1xf32>
      %c0_28 = arith.constant 0 : index
      %c0_29 = arith.constant 0 : index
      %45 = vector.load %arg4[%c0_28, %c0_29] : memref<8x1xf32, #tpu.memory_space<vmem>>, vector<8x1xf32>
      tpu.vector_store %arg4[%c0_28, %c0_29], %44 {strides = array<i32>} : memref<8x1xf32, #tpu.memory_space<vmem>>, vector<8x1xf32>,
    } else {
    }
    return
  }
  func.func @transform_0(%arg0: i32, %arg1: i32) -> (i32, i32) {
    %c0_i32 = arith.constant 0 : i32
    return %arg0, %arg1 : i32, i32
  }
  func.func @transform_1(%arg0: i32, %arg1: i32) -> (i32, i32) {
    %c0_i32 = arith.constant 0 : i32
    %c0_i32_0 = arith.constant 0 : i32
    return %arg0, %c0_i32 : i32, i32
  }
  func.func @transform_2(%arg0: i32, %arg1: i32) -> (i32, i32) {
    %c0_i32 = arith.constant 0 : i32
    %c0_i32_0 = arith.constant 0 : i32
    return %arg0, %c0_i32 : i32, i32
  }
}

</mosaic_0001>

<bundles_post_ra>
// kernel: tpu_custom_call.1
= control target key start
LH: loop header
LB: loop body
LE: loop exit
PB: predicated region body
PF: predicated region fallthrough
CT: control target
= control target key end

     0   :  { %vm28_vm0 = vcmask 261120   ;;  %vm15_vm1 = vcmask 7168   ;;  %v90_v1 = vmov -inf   ;;  %v91_v3 = vmov 0   ;;  %s127_s0 = inlined_call_operand.vmem [shape: f32[8,32], index: 0, kind: input, shape index: {}]   ;;  %s128_s1 = inlined_call_operand.vmem [shape: s32[8,1], index: 1, kind: input, shape index: {}]   ;;  %s129_s2 = inlined_call_operand.vmem [shape: f32[8,1], index: 2, kind: output, shape index: {}]  }
   0x1   :  { %v20_v0 = vld [vmem:[%s127_s0] sm:$0xff]  ;;  %16 = vst.msk [vmem:[#allocation2] sm:$0xff] %vm15_vm1, %v90_v1  ;;  %82 = vset.pattern.permute.xlu0 %v91_v3  ;;  %83 = vset.pattern.permute.xlu1 %v91_v3  ;;  %v92_v4 = vmov 0.0   ;;  %v22_v13 = vlaneseq }
   0x2   :  { %v29_v2 = vsel %vm28_vm0, %v20_v0, -inf  ;;  %17 = vst.msk [vmem:[#allocation3] sm:$0xff] %vm15_vm1, %v92_v4  ;;  %18 = vst.msk [vmem:[#allocation4] sm:$0xff] %vm15_vm1, %v92_v4  ;;  %v21_v5 = vld [vmem:[%s128_s1] sm:$0xff] }
   0x3   :  { %30 = vmax.xlane.f32.xlu0 %v29_v2  ;;  %55 = vperm.xlu1 %83, %v21_v5   ;;  %v23_v14 = vand.u32 127, %v22_v13 }
   0x8   :  { %v27_v6 = vld [vmem:[#allocation2] sm:$0xff] }
   0x9   :  { %v47_v22 = vld [vmem:[#allocation3] sm:$0xff]  ;;  %v53_v26 = vld [vmem:[#allocation4] sm:$0xff] }
  0x82   :  { %v56_v15 = vpop.permute.xlu1 %55 }
  0x83   :  { %vm57_vm2 = vcmp.eq.s32.totalorder %v23_v14, %v56_v15 }
  0x84   :  { %v58_v17 = vsel %vm57_vm2, %v20_v0, 0.0 }
  0x85   :  { %v59_v19 = vsel %vm28_vm0, %v58_v17, 0.0 }
  0x90   :  { %v31_v7 = vpop.xlane.xlu0 %30 }
  0x91   :  { %v32_v8 = vmax.f32 %v27_v6, %v31_v7 }
  0x93   :  { %v33_v9 = vsub.f32 %v27_v6, %v32_v8  ;;  %52 = vst.msk [vmem:[#allocation2] sm:$0xff] %vm15_vm1, %v32_v8  ;;  %38 = vperm.xlu0 %82, %v32_v8  }
  0x95   :  { %v34_v20 = vmul.f32 1.442695, %v33_v9 }
  0x9a   :  { %v67_v32 = vld [vmem:[#allocation2] sm:$0xff] }
 0x112   :  { %v39_v10 = vpop.permute.xlu0 %38 }
 0x113   :  { %v41_v11 = vsub.f32 %v20_v0, %v39_v10 }
 0x115   :  { %v42_v12 = vmul.f32 1.442695, %v41_v11 }
 0x117   :  { %84 = vpow2.f32 %v42_v12 }
 0x118   :  { %86 = vpow2.f32 %v34_v20 }
 0x121   :  { %v85_v16 = vpop.eup %84 }
 0x122   :  { %v44_v18 = vsel %vm28_vm0, %v85_v16, 0.0  ;;  %v87_v21 = vpop.eup %86 }
 0x123   :  { %45 = vadd.xlane.f32.xlu1 %v44_v18  ;;  %v48_v23 = vmul.f32 %v87_v21, %v47_v22 }
 0x127   :  { %60 = vadd.xlane.f32.xlu1 %v59_v19 }
 0x1b0   :  { %v46_v24 = vpop.xlane.xlu1 %45 }
 0x1b1   :  { %v49_v25 = vadd.f32 %v48_v23, %v46_v24 }
 0x1b3   :  { %51 = vst.msk [vmem:[#allocation3] sm:$0xff] %vm15_vm1, %v49_v25 }
 0x1b4   :  { %v61_v27 = vpop.xlane.xlu1 %60 }
 0x1b5   :  { %v62_v28 = vadd.f32 %v61_v27, %v53_v26 }
 0x1b7   :  { %63 = vst.msk [vmem:[#allocation4] sm:$0xff] %vm15_vm1, %v62_v28 }
 0x1ba   :  { %v68_v29 = vld [vmem:[#allocation3] sm:$0xff] }
 0x1bb   :  { %88 = vlog2.f32 %v68_v29 }
 0x1be   :  { %v72_v33 = vld [vmem:[#allocation4] sm:$0xff] }
 0x1c5   :  { %v89_v30 = vpop.eup %88 }
 0x1c6   :  { %v70_v31 = vmul.f32 0.6931472, %v89_v30 }
 0x1c8   :  { %v71_v34 = vadd.f32 %v70_v31, %v67_v32 }
 0x1ca   :  { %v73_v35 = vsub.f32 %v71_v34, %v72_v33 }
 0x1cc   :  { %74 = vst.msk [vmem:[%s129_s2] sm:$0xff] %vm15_vm1, %v73_v35 }

</bundles_post_ra>
